<compile_context>
chip_gen: v5e
topology: v5e:2x2
jax: 0.10.0
libtpu: 0.0.40
codegen_flags: <defaults>
</compile_context>

<pallas_src>
import math
from functools import partial

import jax
import jax.numpy as jnp
from jax.experimental import pallas as pl
from jax.experimental.pallas import tpu as pltpu


def _vmem_limit_bytes():
    cap = 64 * 1024 * 1024
    try:
        cap = int(pltpu.get_tpu_info().vmem_capacity_bytes)
    except Exception:
        pass
    # ~3/4 of physical VMEM (48 MiB on v7x, 96 MiB on v5e/v6e), capped.
    return int(min(cap * 3 // 4, 112 * 1024 * 1024))


# ----------------------------------------------------------------------------
# Fused bottleneck kernel.  One grid step == one batch element, whole image.
# Activations live in (C, H*W) layout: channels on sublanes, spatial on lanes.
# ----------------------------------------------------------------------------
def _bottleneck_kernel(*refs, H, W, mid, oup, identity):
    if identity:
        (x_ref,
         g1_pw, g1_ps, g1_pb, g1_dw, g1_ds, g1_db,
         g2_pw, g2_ps, g2_pb, g2_dw, g2_ds, g2_db,
         o_ref) = refs
    else:
        (x_ref,
         g1_pw, g1_ps, g1_pb, g1_dw, g1_ds, g1_db,
         g2_pw, g2_ps, g2_pb, g2_dw, g2_ds, g2_db,
         sc_dw, sc_ds, sc_db, sc_pw, sc_ps, sc_pb,
         o_ref) = refs

    HW = H * W
    f32 = jnp.float32
    x = x_ref[0].astype(f32)                                   # (Cin, HW)

    # Column-validity masks for the +/-1 W shifts of the flattened 3x3 conv.
    col = jax.lax.broadcasted_iota(jnp.int32, (1, HW), 1) % W
    left_ok = col >= 1                                          # source w-1 in image
    right_ok = col <= W - 2                                     # source w+1 in image

    def pointwise(v, w_ref):
        # 1x1 conv = (Cout,Cin) x (Cin,HW) on the MXU, f32 accumulation.
        return jnp.dot(w_ref[...].astype(f32), v, preferred_element_type=f32)

    def affine(v, s_ref, b_ref):
        # folded BatchNorm: per-channel (C,1) scale/bias broadcast over lanes.
        return v * s_ref[...].astype(f32) + b_ref[...].astype(f32)

    def dw3x3(v, w_ref):
        # Depthwise 3x3, SAME zero padding, on the flattened (C, H*W) layout.
        # H halo handled by the zero extension; W wrap handled by column masks.
        c = v.shape[0]
        zpad = jnp.zeros((c, W + 1), f32)
        vp = jnp.concatenate([zpad, v, zpad], axis=1)           # (C, HW + 2W + 2)
        wk = w_ref[...].astype(f32)                             # (3, 3, C, 1)
        rows = []                                               # 1 partial acc / kernel row
        for dh in range(3):
            acc = None
            for dj in range(3):
                start = (W + 1) + (dh - 1) * W + (dj - 1)
                tap = vp[:, start:start + HW]
                if dj == 0:
                    tap = jnp.where(left_ok, tap, 0.0)
                elif dj == 2:
                    tap = jnp.where(right_ok, tap, 0.0)
                term = tap * wk[dh, dj]                         # (C,1) lane-broadcast
                acc = term if acc is None else acc + term
            rows.append(acc)
        return rows[0] + (rows[1] + rows[2])

    # ---- ghost1: 1x1+BN+ReLU -> dw3x3+BN+ReLU -> channel concat[:mid] ----
    x1a = jnp.maximum(affine(pointwise(x, g1_pw), g1_ps, g1_pb), 0.0)
    x1b = jnp.maximum(affine(dw3x3(x1a, g1_dw), g1_ds, g1_db), 0.0)
    y = jnp.concatenate([x1a, x1b], axis=0)
    if y.shape[0] != mid:
        y = y[:mid]

    # ---- ghost2: 1x1+BN -> dw3x3+BN -> channel concat[:oup] ----
    x2a = affine(pointwise(y, g2_pw), g2_ps, g2_pb)
    x2b = affine(dw3x3(x2a, g2_dw), g2_ds, g2_db)
    z = jnp.concatenate([x2a, x2b], axis=0)
    if z.shape[0] != oup:
        z = z[:oup]

    # ---- shortcut branch + fused residual add; single lane-dense store ----
    if identity:
        sc = x
    else:
        s = affine(dw3x3(x, sc_dw), sc_ds, sc_db)
        sc = affine(pointwise(s, sc_pw), sc_ps, sc_pb)

    o_ref[0] = (z + sc).astype(o_ref.dtype)


# ----------------------------------------------------------------------------
# Wrapper: one pallas_call per GhostBottleneck forward (stride = 1)
# ----------------------------------------------------------------------------
def ghost_bottleneck(x_nchw, params):
    n, cin, h, w = x_nchw.shape
    hw = h * w
    g1, g2 = params["ghost1"], params["ghost2"]
    mid, oup = g1["oup"], g2["oup"]
    identity = params["shortcut"] is None

    x_flat = x_nchw.reshape(n, cin, hw)        # free: NCHW is already (N,C,HW)-contiguous

    g_args = [g1["pw_w"], g1["pw_scale"], g1["pw_bias"],
              g1["dw_w"], g1["dw_scale"], g1["dw_bias"],
              g2["pw_w"], g2["pw_scale"], g2["pw_bias"],
              g2["dw_w"], g2["dw_scale"], g2["dw_bias"]]
    if not identity:
        sp = params["shortcut"]
        g_args += [sp["dw_w"], sp["dw_scale"], sp["dw_bias"],
                   sp["pw_w"], sp["pw_scale"], sp["pw_bias"]]
    args = [x_flat] + g_args

    def _whole(a):
        z = (0,) * a.ndim
        return pl.BlockSpec(a.shape, lambda b, _z=z: _z)

    in_specs = [pl.BlockSpec((1, cin, hw), lambda b: (b, 0, 0))]
    in_specs += [_whole(a) for a in g_args]

    # Advisory cost estimate so XLA schedules surrounding ops sensibly.
    c1, c2 = g1["pw_w"].shape[0], g2["pw_w"].shape[0]
    flops = (2 * c1 * cin + 18 * c1 + 4 * mid) * hw
    flops += (2 * c2 * mid + 18 * c2 + 2 * oup) * hw
    if not identity:
        flops += (18 * cin + 2 * oup * cin + 2 * (cin + oup)) * hw
    flops = (flops + oup * hw) * n
    itemsize = x_flat.dtype.itemsize
    bytes_acc = n * (cin + oup) * hw * itemsize
    bytes_acc += sum(a.size * a.dtype.itemsize for a in g_args)
    ce = pl.CostEstimate(flops=int(flops), transcendentals=0,
                         bytes_accessed=int(bytes_acc))

    out_flat = pl.pallas_call(
        partial(_bottleneck_kernel, H=h, W=w, mid=mid, oup=oup, identity=identity),
        out_shape=jax.ShapeDtypeStruct((n, oup, hw), x_nchw.dtype),
        grid_spec=pltpu.PrefetchScalarGridSpec(
            num_scalar_prefetch=0,
            grid=(n,),
            in_specs=in_specs,
            out_specs=pl.BlockSpec((1, oup, hw), lambda b: (b, 0, 0)),
        ),
        compiler_params=pltpu.CompilerParams(
            dimension_semantics=("parallel",),
            vmem_limit_bytes=_vmem_limit_bytes(),
        ),
        cost_estimate=ce,
    )(*args)
    return out_flat.reshape(n, oup, h, w)


# ----------------------------------------------------------------------------
# Deterministic parameters (BatchNorm folded to per-channel scale/bias)
# ----------------------------------------------------------------------------
def _fold_bn(gamma, beta, mean, var, eps=1e-5):
    scale = gamma / jnp.sqrt(var + eps)
    bias = beta - mean * scale
    return scale.reshape(-1, 1), bias.reshape(-1, 1)


def _init_bn(key, c, dtype):
    k1, k2 = jax.random.split(key)
    gamma = 1.0 + 0.1 * jax.random.normal(k1, (c,), dtype)
    beta = 0.1 * jax.random.normal(k2, (c,), dtype)
    return _fold_bn(gamma, beta, jnp.zeros((c,), dtype), jnp.ones((c,), dtype))


def init_ghost_module_params(key, inp, oup, dtype=jnp.float32):
    ratio = 2
    init_ch = math.ceil(oup / ratio)
    new_ch = init_ch * (ratio - 1)
    k1, k2, k3, k4 = jax.random.split(key, 4)
    pw_w = 0.1 * jax.random.normal(k1, (init_ch, inp), dtype)      # from [init_ch, inp, 1, 1]
    pw_scale, pw_bias = _init_bn(k2, init_ch, dtype)
    dw_w = 0.1 * jax.random.normal(k3, (3, 3, new_ch, 1), dtype)   # from [new_ch, 1, 3, 3]
    dw_scale, dw_bias = _init_bn(k4, new_ch, dtype)
    return dict(oup=oup, pw_w=pw_w, pw_scale=pw_scale, pw_bias=pw_bias,
                dw_w=dw_w, dw_scale=dw_scale, dw_bias=dw_bias)


def init_ghost_bottleneck_params(key, in_chs, mid_chs, out_chs, dtype=jnp.float32):
    kg1, kg2, ks = jax.random.split(key, 3)
    params = {
        "ghost1": init_ghost_module_params(kg1, in_chs, mid_chs, dtype),
        "ghost2": init_ghost_module_params(kg2, mid_chs, out_chs, dtype),
    }
    if in_chs == out_chs:           # stride == 1 -> identity shortcut
        params["shortcut"] = None
    else:
        k1, k2, k3, k4 = jax.random.split(ks, 4)
        dw_w = 0.1 * jax.random.normal(k1, (3, 3, in_chs, 1), dtype)
        dw_scale, dw_bias = _init_bn(k2, in_chs, dtype)
        pw_w = 0.1 * jax.random.normal(k3, (out_chs, in_chs), dtype)
        pw_scale, pw_bias = _init_bn(k4, out_chs, dtype)
        params["shortcut"] = dict(dw_w=dw_w, dw_scale=dw_scale, dw_bias=dw_bias,
                                  pw_w=pw_w, pw_scale=pw_scale, pw_bias=pw_bias)
    return params


# ----------------------------------------------------------------------------
# Pure-JAX reference (correctness check only), NCHW like the PyTorch module
# ----------------------------------------------------------------------------
def _ref_pointwise(x, w, scale, bias, relu):
    y = jnp.einsum("nchw,oc->nohw", x, w)
    y = y * scale.reshape(1, -1, 1, 1) + bias.reshape(1, -1, 1, 1)
    return jnp.maximum(y, 0.0) if relu else y


def _ref_dw3x3(x, w, scale, bias, relu):
    c = x.shape[1]
    wk = jnp.transpose(w, (2, 3, 0, 1))            # (C, 1, 3, 3) OIHW
    y = jax.lax.conv_general_dilated(
        x, wk, (1, 1), "SAME",
        dimension_numbers=("NCHW", "OIHW", "NCHW"), feature_group_count=c)
    y = y * scale.reshape(1, -1, 1, 1) + bias.reshape(1, -1, 1, 1)
    return jnp.maximum(y, 0.0) if relu else y


def _ref_ghost_module(x, p, relu):
    x1 = _ref_pointwise(x, p["pw_w"], p["pw_scale"], p["pw_bias"], relu)
    x2 = _ref_dw3x3(x1, p["dw_w"], p["dw_scale"], p["dw_bias"], relu)
    return jnp.concatenate([x1, x2], axis=1)[:, :p["oup"]]


def _ref_ghost_bottleneck(x, params):
    residual = x
    y = _ref_ghost_module(x, params["ghost1"], True)
    y = _ref_ghost_module(y, params["ghost2"], False)
    if params["shortcut"] is None:
        sc = residual
    else:
        sp = params["shortcut"]
        sc = _ref_dw3x3(residual, sp["dw_w"], sp["dw_scale"], sp["dw_bias"], False)
        sc = _ref_pointwise(sc, sp["pw_w"], sp["pw_scale"], sp["pw_bias"], False)
    return y + sc


# ----------------------------------------------------------------------------
if __name__ == "__main__":
    key = jax.random.PRNGKey(0)
    kx, kp1, kp2 = jax.random.split(key, 3)

    N, H, W = 2, 16, 16
    in_chs, mid_chs = 4, 8
    x = jax.random.normal(kx, (N, in_chs, H, W), jnp.float32)

    # Config A: in_chs == out_chs, stride=1 -> identity shortcut (fused add).
    pA = init_ghost_bottleneck_params(kp1, in_chs, mid_chs, in_chs)
    yA = jax.block_until_ready(ghost_bottleneck(x, pA))
    refA = _ref_ghost_bottleneck(x, pA)
    assert yA.shape == (N, in_chs, H, W)
    assert jnp.allclose(yA, refA, atol=2e-4, rtol=2e-4), "config A mismatch"

    # Config B: in_chs != out_chs -> fused depthwise+pointwise shortcut branch.
    out_chs_b = 6
    pB = init_ghost_bottleneck_params(kp2, in_chs, mid_chs, out_chs_b)
    yB = jax.block_until_ready(ghost_bottleneck(x, pB))
    refB = _ref_ghost_bottleneck(x, pB)
    assert yB.shape == (N, out_chs_b, H, W)
    assert jnp.allclose(yB, refB, atol=2e-4, rtol=2e-4), "config B mismatch"

    print("KERNEL_OK")
</pallas_src>

<mosaic_0001>
module attributes {stable_mosaic.version = 11 : i64} {
  func.func @_bottleneck_kernel(%arg0: i32, %arg1: memref<1x4x256xf32, #tpu.memory_space<vmem>>, %arg2: memref<4x4xf32, #tpu.memory_space<vmem>>, %arg3: memref<4x1xf32, #tpu.memory_space<vmem>>, %arg4: memref<4x1xf32, #tpu.memory_space<vmem>>, %arg5: memref<3x3x4x1xf32, #tpu.memory_space<vmem>>, %arg6: memref<4x1xf32, #tpu.memory_space<vmem>>, %arg7: memref<4x1xf32, #tpu.memory_space<vmem>>, %arg8: memref<2x8xf32, #tpu.memory_space<vmem>>, %arg9: memref<2x1xf32, #tpu.memory_space<vmem>>, %arg10: memref<2x1xf32, #tpu.memory_space<vmem>>, %arg11: memref<3x3x2x1xf32, #tpu.memory_space<vmem>>, %arg12: memref<2x1xf32, #tpu.memory_space<vmem>>, %arg13: memref<2x1xf32, #tpu.memory_space<vmem>>, %arg14: memref<1x4x256xf32, #tpu.memory_space<vmem>>) attributes {dimension_semantics = [#tpu.dimension_semantics<parallel>], iteration_bounds = array<i64: 2>, scalar_prefetch = 0 : i64, scratch_operands = 0 : i64, tpu.core_type = #tpu.core_type<tc>, window_params = [{transform_indices = @transform_0, window_bounds = array<i64: 1, 4, 256>}, {pipeline_mode = #tpu.pipeline_mode<synchronous>, transform_indices = @transform_1, window_bounds = array<i64: 4, 4>}, {pipeline_mode = #tpu.pipeline_mode<synchronous>, transform_indices = @transform_2, window_bounds = array<i64: 4, 1>}, {pipeline_mode = #tpu.pipeline_mode<synchronous>, transform_indices = @transform_3, window_bounds = array<i64: 4, 1>}, {pipeline_mode = #tpu.pipeline_mode<synchronous>, transform_indices = @transform_4, window_bounds = array<i64: 3, 3, 4, 1>}, {pipeline_mode = #tpu.pipeline_mode<synchronous>, transform_indices = @transform_5, window_bounds = array<i64: 4, 1>}, {pipeline_mode = #tpu.pipeline_mode<synchronous>, transform_indices = @transform_6, window_bounds = array<i64: 4, 1>}, {pipeline_mode = #tpu.pipeline_mode<synchronous>, transform_indices = @transform_7, window_bounds = array<i64: 2, 8>}, {pipeline_mode = #tpu.pipeline_mode<synchronous>, transform_indices = @transform_8, window_bounds = array<i64: 2, 1>}, {pipeline_mode = #tpu.pipeline_mode<synchronous>, transform_indices = @transform_9, window_bounds = array<i64: 2, 1>}, {pipeline_mode = #tpu.pipeline_mode<synchronous>, transform_indices = @transform_10, window_bounds = array<i64: 3, 3, 2, 1>}, {pipeline_mode = #tpu.pipeline_mode<synchronous>, transform_indices = @transform_11, window_bounds = array<i64: 2, 1>}, {pipeline_mode = #tpu.pipeline_mode<synchronous>, transform_indices = @transform_12, window_bounds = array<i64: 2, 1>}, {transform_indices = @transform_13, window_bounds = array<i64: 1, 4, 256>}]} {
    %c0 = arith.constant 0 : index
    %c0_0 = arith.constant 0 : index
    %c0_1 = arith.constant 0 : index
    %0 = vector.load %arg1[%c0, %c0_0, %c0_1] : memref<1x4x256xf32, #tpu.memory_space<vmem>>, vector<1x4x256xf32>
    %1 = vector.shape_cast %0 : vector<1x4x256xf32> to vector<4x256xf32>
    %2 = tpu.iota {dimensions = array<i32: 1>} : vector<1x256xi32>
    %c16_i32 = arith.constant 16 : i32
    %c0_i32 = arith.constant 0 : i32
    %3 = arith.cmpi eq, %c16_i32, %c0_i32 : i32
    %c1_i32 = arith.constant 1 : i32
    %4 = arith.select %3, %c1_i32, %c16_i32 : i32
    %5 = vector.broadcast %4 : i32 to vector<1x256xi32>
    %6 = arith.remsi %2, %5 : vector<1x256xi32>
    %c0_i32_2 = arith.constant 0 : i32
    %7 = vector.broadcast %c0_i32_2 : i32 to vector<1x256xi32>
    %8 = arith.cmpi ne, %6, %7 : vector<1x256xi32>
    %c0_i32_3 = arith.constant 0 : i32
    %9 = vector.broadcast %c0_i32_3 : i32 to vector<1x256xi32>
    %10 = arith.cmpi slt, %6, %9 : vector<1x256xi32>
    %c0_i32_4 = arith.constant 0 : i32
    %11 = arith.cmpi slt, %4, %c0_i32_4 : i32
    %12 = vector.broadcast %11 : i1 to vector<1x256xi1>
    %13 = vector.broadcast %12 : vector<1x256xi1> to vector<1x256xi1>
    %14 = arith.xori %10, %13 : vector<1x256xi1>
    %15 = arith.andi %14, %8 : vector<1x256xi1>
    %16 = vector.broadcast %4 : i32 to vector<1x256xi32>
    %17 = arith.addi %6, %16 : vector<1x256xi32>
    %18 = arith.select %15, %17, %6 : vector<1x256xi1>, vector<1x256xi32>
    %c1_i32_5 = arith.constant 1 : i32
    %19 = vector.broadcast %c1_i32_5 : i32 to vector<1x256xi32>
    %20 = arith.cmpi sge, %18, %19 : vector<1x256xi32>
    %c14_i32 = arith.constant 14 : i32
    %21 = vector.broadcast %c14_i32 : i32 to vector<1x256xi32>
    %22 = arith.cmpi sle, %18, %21 : vector<1x256xi32>
    %c0_6 = arith.constant 0 : index
    %c0_7 = arith.constant 0 : index
    %23 = vector.load %arg2[%c0_6, %c0_7] : memref<4x4xf32, #tpu.memory_space<vmem>>, vector<4x4xf32>
    %cst = arith.constant dense<0.000000e+00> : vector<4x256xf32>
    %24 = tpu.matmul %23, %1, %cst {dimension_numbers = #tpu.dot_dimension_numbers<[1], [0], [0], [1], [0, 0, 1, 1], [], []>} : vector<4x4xf32>, vector<4x256xf32>, vector<4x256xf32> -> vector<4x256xf32>
    %c0_8 = arith.constant 0 : index
    %c0_9 = arith.constant 0 : index
    %25 = vector.load %arg3[%c0_8, %c0_9] : memref<4x1xf32, #tpu.memory_space<vmem>>, vector<4x1xf32>
    %26 = vector.broadcast %25 : vector<4x1xf32> to vector<4x256xf32>
    %27 = arith.mulf %24, %26 : vector<4x256xf32>
    %c0_10 = arith.constant 0 : index
    %c0_11 = arith.constant 0 : index
    %28 = vector.load %arg4[%c0_10, %c0_11] : memref<4x1xf32, #tpu.memory_space<vmem>>, vector<4x1xf32>
    %29 = vector.broadcast %28 : vector<4x1xf32> to vector<4x256xf32>
    %30 = arith.addf %27, %29 : vector<4x256xf32>
    %cst_12 = arith.constant 0.000000e+00 : f32
    %31 = vector.broadcast %cst_12 : f32 to vector<4x256xf32>
    %32 = arith.maximumf %30, %31 : vector<4x256xf32>
    %cst_13 = arith.constant 0.000000e+00 : f32
    %33 = vector.broadcast %cst_13 : f32 to vector<4x17xf32>
    %34 = tpu.concatenate %33, %32, %33 in 1 : vector<4x17xf32>, vector<4x256xf32>, vector<4x17xf32> -> vector<4x290xf32>
    %c0_14 = arith.constant 0 : index
    %c0_15 = arith.constant 0 : index
    %c0_16 = arith.constant 0 : index
    %c0_17 = arith.constant 0 : index
    %35 = vector.load %arg5[%c0_14, %c0_15, %c0_16, %c0_17] : memref<3x3x4x1xf32, #tpu.memory_space<vmem>>, vector<3x3x4x1xf32>
    %36 = vector.extract_strided_slice %34 {offsets = [0, 0], sizes = [4, 256], strides = [1, 1]} : vector<4x290xf32> to vector<4x256xf32>
    %cst_18 = arith.constant 0.000000e+00 : f32
    %37 = vector.shape_cast %20 : vector<1x256xi1> to vector<1x256xi1>
    %38 = vector.broadcast %37 : vector<1x256xi1> to vector<4x256xi1>
    %39 = vector.broadcast %cst_18 : f32 to vector<4x256xf32>
    %40 = arith.select %38, %36, %39 : vector<4x256xi1>, vector<4x256xf32>
    %41 = vector.extract_strided_slice %35 {offsets = [0, 0, 0, 0], sizes = [1, 1, 4, 1], strides = [1, 1, 1, 1]} : vector<3x3x4x1xf32> to vector<1x1x4x1xf32>
    %42 = vector.shape_cast %41 : vector<1x1x4x1xf32> to vector<4x1xf32>
    %43 = vector.broadcast %42 : vector<4x1xf32> to vector<4x256xf32>
    %44 = arith.mulf %40, %43 : vector<4x256xf32>
    %45 = vector.extract_strided_slice %34 {offsets = [0, 1], sizes = [4, 256], strides = [1, 1]} : vector<4x290xf32> to vector<4x256xf32>
    %46 = vector.extract_strided_slice %35 {offsets = [0, 1, 0, 0], sizes = [1, 1, 4, 1], strides = [1, 1, 1, 1]} : vector<3x3x4x1xf32> to vector<1x1x4x1xf32>
    %47 = vector.shape_cast %46 : vector<1x1x4x1xf32> to vector<4x1xf32>
    %48 = vector.broadcast %47 : vector<4x1xf32> to vector<4x256xf32>
    %49 = arith.mulf %45, %48 : vector<4x256xf32>
    %50 = arith.addf %44, %49 : vector<4x256xf32>
    %51 = vector.extract_strided_slice %34 {offsets = [0, 2], sizes = [4, 256], strides = [1, 1]} : vector<4x290xf32> to vector<4x256xf32>
    %cst_19 = arith.constant 0.000000e+00 : f32
    %52 = vector.shape_cast %22 : vector<1x256xi1> to vector<1x256xi1>
    %53 = vector.broadcast %52 : vector<1x256xi1> to vector<4x256xi1>
    %54 = vector.broadcast %cst_19 : f32 to vector<4x256xf32>
    %55 = arith.select %53, %51, %54 : vector<4x256xi1>, vector<4x256xf32>
    %56 = vector.extract_strided_slice %35 {offsets = [0, 2, 0, 0], sizes = [1, 1, 4, 1], strides = [1, 1, 1, 1]} : vector<3x3x4x1xf32> to vector<1x1x4x1xf32>
    %57 = vector.shape_cast %56 : vector<1x1x4x1xf32> to vector<4x1xf32>
    %58 = vector.broadcast %57 : vector<4x1xf32> to vector<4x256xf32>
    %59 = arith.mulf %55, %58 : vector<4x256xf32>
    %60 = arith.addf %50, %59 : vector<4x256xf32>
    %61 = vector.extract_strided_slice %34 {offsets = [0, 16], sizes = [4, 256], strides = [1, 1]} : vector<4x290xf32> to vector<4x256xf32>
    %cst_20 = arith.constant 0.000000e+00 : f32
    %62 = vector.shape_cast %20 : vector<1x256xi1> to vector<1x256xi1>
    %63 = vector.broadcast %62 : vector<1x256xi1> to vector<4x256xi1>
    %64 = vector.broadcast %cst_20 : f32 to vector<4x256xf32>
    %65 = arith.select %63, %61, %64 : vector<4x256xi1>, vector<4x256xf32>
    %66 = vector.extract_strided_slice %35 {offsets = [1, 0, 0, 0], sizes = [1, 1, 4, 1], strides = [1, 1, 1, 1]} : vector<3x3x4x1xf32> to vector<1x1x4x1xf32>
    %67 = vector.shape_cast %66 : vector<1x1x4x1xf32> to vector<4x1xf32>
    %68 = vector.broadcast %67 : vector<4x1xf32> to vector<4x256xf32>
    %69 = arith.mulf %65, %68 : vector<4x256xf32>
    %70 = vector.extract_strided_slice %34 {offsets = [0, 17], sizes = [4, 256], strides = [1, 1]} : vector<4x290xf32> to vector<4x256xf32>
    %71 = vector.extract_strided_slice %35 {offsets = [1, 1, 0, 0], sizes = [1, 1, 4, 1], strides = [1, 1, 1, 1]} : vector<3x3x4x1xf32> to vector<1x1x4x1xf32>
    %72 = vector.shape_cast %71 : vector<1x1x4x1xf32> to vector<4x1xf32>
    %73 = vector.broadcast %72 : vector<4x1xf32> to vector<4x256xf32>
    %74 = arith.mulf %70, %73 : vector<4x256xf32>
    %75 = arith.addf %69, %74 : vector<4x256xf32>
    %76 = vector.extract_strided_slice %34 {offsets = [0, 18], sizes = [4, 256], strides = [1, 1]} : vector<4x290xf32> to vector<4x256xf32>
    %cst_21 = arith.constant 0.000000e+00 : f32
    %77 = vector.shape_cast %22 : vector<1x256xi1> to vector<1x256xi1>
    %78 = vector.broadcast %77 : vector<1x256xi1> to vector<4x256xi1>
    %79 = vector.broadcast %cst_21 : f32 to vector<4x256xf32>
    %80 = arith.select %78, %76, %79 : vector<4x256xi1>, vector<4x256xf32>
    %81 = vector.extract_strided_slice %35 {offsets = [1, 2, 0, 0], sizes = [1, 1, 4, 1], strides = [1, 1, 1, 1]} : vector<3x3x4x1xf32> to vector<1x1x4x1xf32>
    %82 = vector.shape_cast %81 : vector<1x1x4x1xf32> to vector<4x1xf32>
    %83 = vector.broadcast %82 : vector<4x1xf32> to vector<4x256xf32>
    %84 = arith.mulf %80, %83 : vector<4x256xf32>
    %85 = arith.addf %75, %84 : vector<4x256xf32>
    %86 = vector.extract_strided_slice %34 {offsets = [0, 32], sizes = [4, 256], strides = [1, 1]} : vector<4x290xf32> to vector<4x256xf32>
    %cst_22 = arith.constant 0.000000e+00 : f32
    %87 = vector.shape_cast %20 : vector<1x256xi1> to vector<1x256xi1>
    %88 = vector.broadcast %87 : vector<1x256xi1> to vector<4x256xi1>
    %89 = vector.broadcast %cst_22 : f32 to vector<4x256xf32>
    %90 = arith.select %88, %86, %89 : vector<4x256xi1>, vector<4x256xf32>
    %91 = vector.extract_strided_slice %35 {offsets = [2, 0, 0, 0], sizes = [1, 1, 4, 1], strides = [1, 1, 1, 1]} : vector<3x3x4x1xf32> to vector<1x1x4x1xf32>
    %92 = vector.shape_cast %91 : vector<1x1x4x1xf32> to vector<4x1xf32>
    %93 = vector.broadcast %92 : vector<4x1xf32> to vector<4x256xf32>
    %94 = arith.mulf %90, %93 : vector<4x256xf32>
    %95 = vector.extract_strided_slice %34 {offsets = [0, 33], sizes = [4, 256], strides = [1, 1]} : vector<4x290xf32> to vector<4x256xf32>
    %96 = vector.extract_strided_slice %35 {offsets = [2, 1, 0, 0], sizes = [1, 1, 4, 1], strides = [1, 1, 1, 1]} : vector<3x3x4x1xf32> to vector<1x1x4x1xf32>
    %97 = vector.shape_cast %96 : vector<1x1x4x1xf32> to vector<4x1xf32>
    %98 = vector.broadcast %97 : vector<4x1xf32> to vector<4x256xf32>
    %99 = arith.mulf %95, %98 : vector<4x256xf32>
    %100 = arith.addf %94, %99 : vector<4x256xf32>
    %101 = vector.extract_strided_slice %34 {offsets = [0, 34], sizes = [4, 256], strides = [1, 1]} : vector<4x290xf32> to vector<4x256xf32>
    %cst_23 = arith.constant 0.000000e+00 : f32
    %102 = vector.shape_cast %22 : vector<1x256xi1> to vector<1x256xi1>
    %103 = vector.broadcast %102 : vector<1x256xi1> to vector<4x256xi1>
    %104 = vector.broadcast %cst_23 : f32 to vector<4x256xf32>
    %105 = arith.select %103, %101, %104 : vector<4x256xi1>, vector<4x256xf32>
    %106 = vector.extract_strided_slice %35 {offsets = [2, 2, 0, 0], sizes = [1, 1, 4, 1], strides = [1, 1, 1, 1]} : vector<3x3x4x1xf32> to vector<1x1x4x1xf32>
    %107 = vector.shape_cast %106 : vector<1x1x4x1xf32> to vector<4x1xf32>
    %108 = vector.broadcast %107 : vector<4x1xf32> to vector<4x256xf32>
    %109 = arith.mulf %105, %108 : vector<4x256xf32>
    %110 = arith.addf %100, %109 : vector<4x256xf32>
    %111 = arith.addf %85, %110 : vector<4x256xf32>
    %112 = arith.addf %60, %111 : vector<4x256xf32>
    %c0_24 = arith.constant 0 : index
    %c0_25 = arith.constant 0 : index
    %113 = vector.load %arg6[%c0_24, %c0_25] : memref<4x1xf32, #tpu.memory_space<vmem>>, vector<4x1xf32>
    %114 = vector.broadcast %113 : vector<4x1xf32> to vector<4x256xf32>
    %115 = arith.mulf %112, %114 : vector<4x256xf32>
    %c0_26 = arith.constant 0 : index
    %c0_27 = arith.constant 0 : index
    %116 = vector.load %arg7[%c0_26, %c0_27] : memref<4x1xf32, #tpu.memory_space<vmem>>, vector<4x1xf32>
    %117 = vector.broadcast %116 : vector<4x1xf32> to vector<4x256xf32>
    %118 = arith.addf %115, %117 : vector<4x256xf32>
    %cst_28 = arith.constant 0.000000e+00 : f32
    %119 = vector.broadcast %cst_28 : f32 to vector<4x256xf32>
    %120 = arith.maximumf %118, %119 : vector<4x256xf32>
    %121 = tpu.concatenate %32, %120 in 0 : vector<4x256xf32>, vector<4x256xf32> -> vector<8x256xf32>
    %c0_29 = arith.constant 0 : index
    %c0_30 = arith.constant 0 : index
    %122 = vector.load %arg8[%c0_29, %c0_30] : memref<2x8xf32, #tpu.memory_space<vmem>>, vector<2x8xf32>
    %cst_31 = arith.constant dense<0.000000e+00> : vector<2x256xf32>
    %123 = tpu.matmul %122, %121, %cst_31 {dimension_numbers = #tpu.dot_dimension_numbers<[1], [0], [0], [1], [0, 0, 1, 1], [], []>} : vector<2x8xf32>, vector<8x256xf32>, vector<2x256xf32> -> vector<2x256xf32>
    %c0_32 = arith.constant 0 : index
    %c0_33 = arith.constant 0 : index
    %124 = vector.load %arg9[%c0_32, %c0_33] : memref<2x1xf32, #tpu.memory_space<vmem>>, vector<2x1xf32>
    %125 = vector.broadcast %124 : vector<2x1xf32> to vector<2x256xf32>
    %126 = arith.mulf %123, %125 : vector<2x256xf32>
    %c0_34 = arith.constant 0 : index
    %c0_35 = arith.constant 0 : index
    %127 = vector.load %arg10[%c0_34, %c0_35] : memref<2x1xf32, #tpu.memory_space<vmem>>, vector<2x1xf32>
    %128 = vector.broadcast %127 : vector<2x1xf32> to vector<2x256xf32>
    %129 = arith.addf %126, %128 : vector<2x256xf32>
    %cst_36 = arith.constant 0.000000e+00 : f32
    %130 = vector.broadcast %cst_36 : f32 to vector<2x17xf32>
    %131 = tpu.concatenate %130, %129, %130 in 1 : vector<2x17xf32>, vector<2x256xf32>, vector<2x17xf32> -> vector<2x290xf32>
    %c0_37 = arith.constant 0 : index
    %c0_38 = arith.constant 0 : index
    %c0_39 = arith.constant 0 : index
    %c0_40 = arith.constant 0 : index
    %132 = vector.load %arg11[%c0_37, %c0_38, %c0_39, %c0_40] : memref<3x3x2x1xf32, #tpu.memory_space<vmem>>, vector<3x3x2x1xf32>
    %133 = vector.extract_strided_slice %131 {offsets = [0, 0], sizes = [2, 256], strides = [1, 1]} : vector<2x290xf32> to vector<2x256xf32>
    %cst_41 = arith.constant 0.000000e+00 : f32
    %134 = vector.shape_cast %20 : vector<1x256xi1> to vector<1x256xi1>
    %135 = vector.broadcast %134 : vector<1x256xi1> to vector<2x256xi1>
    %136 = vector.broadcast %cst_41 : f32 to vector<2x256xf32>
    %137 = arith.select %135, %133, %136 : vector<2x256xi1>, vector<2x256xf32>
    %138 = vector.extract_strided_slice %132 {offsets = [0, 0, 0, 0], sizes = [1, 1, 2, 1], strides = [1, 1, 1, 1]} : vector<3x3x2x1xf32> to vector<1x1x2x1xf32>
    %139 = vector.shape_cast %138 : vector<1x1x2x1xf32> to vector<2x1xf32>
    %140 = vector.broadcast %139 : vector<2x1xf32> to vector<2x256xf32>
    %141 = arith.mulf %137, %140 : vector<2x256xf32>
    %142 = vector.extract_strided_slice %131 {offsets = [0, 1], sizes = [2, 256], strides = [1, 1]} : vector<2x290xf32> to vector<2x256xf32>
    %143 = vector.extract_strided_slice %132 {offsets = [0, 1, 0, 0], sizes = [1, 1, 2, 1], strides = [1, 1, 1, 1]} : vector<3x3x2x1xf32> to vector<1x1x2x1xf32>
    %144 = vector.shape_cast %143 : vector<1x1x2x1xf32> to vector<2x1xf32>
    %145 = vector.broadcast %144 : vector<2x1xf32> to vector<2x256xf32>
    %146 = arith.mulf %142, %145 : vector<2x256xf32>
    %147 = arith.addf %141, %146 : vector<2x256xf32>
    %148 = vector.extract_strided_slice %131 {offsets = [0, 2], sizes = [2, 256], strides = [1, 1]} : vector<2x290xf32> to vector<2x256xf32>
    %cst_42 = arith.constant 0.000000e+00 : f32
    %149 = vector.shape_cast %22 : vector<1x256xi1> to vector<1x256xi1>
    %150 = vector.broadcast %149 : vector<1x256xi1> to vector<2x256xi1>
    %151 = vector.broadcast %cst_42 : f32 to vector<2x256xf32>
    %152 = arith.select %150, %148, %151 : vector<2x256xi1>, vector<2x256xf32>
    %153 = vector.extract_strided_slice %132 {offsets = [0, 2, 0, 0], sizes = [1, 1, 2, 1], strides = [1, 1, 1, 1]} : vector<3x3x2x1xf32> to vector<1x1x2x1xf32>
    %154 = vector.shape_cast %153 : vector<1x1x2x1xf32> to vector<2x1xf32>
    %155 = vector.broadcast %154 : vector<2x1xf32> to vector<2x256xf32>
    %156 = arith.mulf %152, %155 : vector<2x256xf32>
    %157 = arith.addf %147, %156 : vector<2x256xf32>
    %158 = vector.extract_strided_slice %131 {offsets = [0, 16], sizes = [2, 256], strides = [1, 1]} : vector<2x290xf32> to vector<2x256xf32>
    %cst_43 = arith.constant 0.000000e+00 : f32
    %159 = vector.shape_cast %20 : vector<1x256xi1> to vector<1x256xi1>
    %160 = vector.broadcast %159 : vector<1x256xi1> to vector<2x256xi1>
    %161 = vector.broadcast %cst_43 : f32 to vector<2x256xf32>
    %162 = arith.select %160, %158, %161 : vector<2x256xi1>, vector<2x256xf32>
    %163 = vector.extract_strided_slice %132 {offsets = [1, 0, 0, 0], sizes = [1, 1, 2, 1], strides = [1, 1, 1, 1]} : vector<3x3x2x1xf32> to vector<1x1x2x1xf32>
    %164 = vector.shape_cast %163 : vector<1x1x2x1xf32> to vector<2x1xf32>
    %165 = vector.broadcast %164 : vector<2x1xf32> to vector<2x256xf32>
    %166 = arith.mulf %162, %165 : vector<2x256xf32>
    %167 = vector.extract_strided_slice %131 {offsets = [0, 17], sizes = [2, 256], strides = [1, 1]} : vector<2x290xf32> to vector<2x256xf32>
    %168 = vector.extract_strided_slice %132 {offsets = [1, 1, 0, 0], sizes = [1, 1, 2, 1], strides = [1, 1, 1, 1]} : vector<3x3x2x1xf32> to vector<1x1x2x1xf32>
    %169 = vector.shape_cast %168 : vector<1x1x2x1xf32> to vector<2x1xf32>
    %170 = vector.broadcast %169 : vector<2x1xf32> to vector<2x256xf32>
    %171 = arith.mulf %167, %170 : vector<2x256xf32>
    %172 = arith.addf %166, %171 : vector<2x256xf32>
    %173 = vector.extract_strided_slice %131 {offsets = [0, 18], sizes = [2, 256], strides = [1, 1]} : vector<2x290xf32> to vector<2x256xf32>
    %cst_44 = arith.constant 0.000000e+00 : f32
    %174 = vector.shape_cast %22 : vector<1x256xi1> to vector<1x256xi1>
    %175 = vector.broadcast %174 : vector<1x256xi1> to vector<2x256xi1>
    %176 = vector.broadcast %cst_44 : f32 to vector<2x256xf32>
    %177 = arith.select %175, %173, %176 : vector<2x256xi1>, vector<2x256xf32>
    %178 = vector.extract_strided_slice %132 {offsets = [1, 2, 0, 0], sizes = [1, 1, 2, 1], strides = [1, 1, 1, 1]} : vector<3x3x2x1xf32> to vector<1x1x2x1xf32>
    %179 = vector.shape_cast %178 : vector<1x1x2x1xf32> to vector<2x1xf32>
    %180 = vector.broadcast %179 : vector<2x1xf32> to vector<2x256xf32>
    %181 = arith.mulf %177, %180 : vector<2x256xf32>
    %182 = arith.addf %172, %181 : vector<2x256xf32>
    %183 = vector.extract_strided_slice %131 {offsets = [0, 32], sizes = [2, 256], strides = [1, 1]} : vector<2x290xf32> to vector<2x256xf32>
    %cst_45 = arith.constant 0.000000e+00 : f32
    %184 = vector.shape_cast %20 : vector<1x256xi1> to vector<1x256xi1>
    %185 = vector.broadcast %184 : vector<1x256xi1> to vector<2x256xi1>
    %186 = vector.broadcast %cst_45 : f32 to vector<2x256xf32>
    %187 = arith.select %185, %183, %186 : vector<2x256xi1>, vector<2x256xf32>
    %188 = vector.extract_strided_slice %132 {offsets = [2, 0, 0, 0], sizes = [1, 1, 2, 1], strides = [1, 1, 1, 1]} : vector<3x3x2x1xf32> to vector<1x1x2x1xf32>
    %189 = vector.shape_cast %188 : vector<1x1x2x1xf32> to vector<2x1xf32>
    %190 = vector.broadcast %189 : vector<2x1xf32> to vector<2x256xf32>
    %191 = arith.mulf %187, %190 : vector<2x256xf32>
    %192 = vector.extract_strided_slice %131 {offsets = [0, 33], sizes = [2, 256], strides = [1, 1]} : vector<2x290xf32> to vector<2x256xf32>
    %193 = vector.extract_strided_slice %132 {offsets = [2, 1, 0, 0], sizes = [1, 1, 2, 1], strides = [1, 1, 1, 1]} : vector<3x3x2x1xf32> to vector<1x1x2x1xf32>
    %194 = vector.shape_cast %193 : vector<1x1x2x1xf32> to vector<2x1xf32>
    %195 = vector.broadcast %194 : vector<2x1xf32> to vector<2x256xf32>
    %196 = arith.mulf %192, %195 : vector<2x256xf32>
    %197 = arith.addf %191, %196 : vector<2x256xf32>
    %198 = vector.extract_strided_slice %131 {offsets = [0, 34], sizes = [2, 256], strides = [1, 1]} : vector<2x290xf32> to vector<2x256xf32>
    %cst_46 = arith.constant 0.000000e+00 : f32
    %199 = vector.shape_cast %22 : vector<1x256xi1> to vector<1x256xi1>
    %200 = vector.broadcast %199 : vector<1x256xi1> to vector<2x256xi1>
    %201 = vector.broadcast %cst_46 : f32 to vector<2x256xf32>
    %202 = arith.select %200, %198, %201 : vector<2x256xi1>, vector<2x256xf32>
    %203 = vector.extract_strided_slice %132 {offsets = [2, 2, 0, 0], sizes = [1, 1, 2, 1], strides = [1, 1, 1, 1]} : vector<3x3x2x1xf32> to vector<1x1x2x1xf32>
    %204 = vector.shape_cast %203 : vector<1x1x2x1xf32> to vector<2x1xf32>
    %205 = vector.broadcast %204 : vector<2x1xf32> to vector<2x256xf32>
    %206 = arith.mulf %202, %205 : vector<2x256xf32>
    %207 = arith.addf %197, %206 : vector<2x256xf32>
    %208 = arith.addf %182, %207 : vector<2x256xf32>
    %209 = arith.addf %157, %208 : vector<2x256xf32>
    %c0_47 = arith.constant 0 : index
    %c0_48 = arith.constant 0 : index
    %210 = vector.load %arg12[%c0_47, %c0_48] : memref<2x1xf32, #tpu.memory_space<vmem>>, vector<2x1xf32>
    %211 = vector.broadcast %210 : vector<2x1xf32> to vector<2x256xf32>
    %212 = arith.mulf %209, %211 : vector<2x256xf32>
    %c0_49 = arith.constant 0 : index
    %c0_50 = arith.constant 0 : index
    %213 = vector.load %arg13[%c0_49, %c0_50] : memref<2x1xf32, #tpu.memory_space<vmem>>, vector<2x1xf32>
    %214 = vector.broadcast %213 : vector<2x1xf32> to vector<2x256xf32>
    %215 = arith.addf %212, %214 : vector<2x256xf32>
    %216 = tpu.concatenate %129, %215 in 0 : vector<2x256xf32>, vector<2x256xf32> -> vector<4x256xf32>
    %217 = arith.addf %216, %1 : vector<4x256xf32>
    %c0_51 = arith.constant 0 : index
    %c0_52 = arith.constant 0 : index
    %c0_53 = arith.constant 0 : index
    %218 = vector.load %arg14[%c0_51, %c0_52, %c0_53] : memref<1x4x256xf32, #tpu.memory_space<vmem>>, vector<1x4x256xf32>
    %219 = vector.shape_cast %218 : vector<1x4x256xf32> to vector<4x256xf32>
    %220 = vector.shape_cast %217 : vector<4x256xf32> to vector<1x4x256xf32>
    tpu.vector_store %arg14[%c0_51, %c0_52, %c0_53], %220 {strides = array<i32>} : memref<1x4x256xf32, #tpu.memory_space<vmem>>, vector<1x4x256xf32>,
    return
  }
  func.func @transform_0(%arg0: i32) -> (i32, i32, i32) {
    %c0_i32 = arith.constant 0 : i32
    %c0_i32_0 = arith.constant 0 : i32
    %c0_i32_1 = arith.constant 0 : i32
    return %arg0, %c0_i32, %c0_i32_0 : i32, i32, i32
  }
  func.func @transform_1(%arg0: i32) -> (i32, i32) {
    %c0_i32 = arith.constant 0 : i32
    %c0_i32_0 = arith.constant 0 : i32
    %c0_i32_1 = arith.constant 0 : i32
    return %c0_i32, %c0_i32_0 : i32, i32
  }
  func.func @transform_2(%arg0: i32) -> (i32, i32) {
    %c0_i32 = arith.constant 0 : i32
    %c0_i32_0 = arith.constant 0 : i32
    %c0_i32_1 = arith.constant 0 : i32
    return %c0_i32, %c0_i32_0 : i32, i32
  }
  func.func @transform_3(%arg0: i32) -> (i32, i32) {
    %c0_i32 = arith.constant 0 : i32
    %c0_i32_0 = arith.constant 0 : i32
    %c0_i32_1 = arith.constant 0 : i32
    return %c0_i32, %c0_i32_0 : i32, i32
  }
  func.func @transform_4(%arg0: i32) -> (i32, i32, i32, i32) {
    %c0_i32 = arith.constant 0 : i32
    %c0_i32_0 = arith.constant 0 : i32
    %c0_i32_1 = arith.constant 0 : i32
    %c0_i32_2 = arith.constant 0 : i32
    %c0_i32_3 = arith.constant 0 : i32
    return %c0_i32, %c0_i32_0, %c0_i32_1, %c0_i32_2 : i32, i32, i32, i32
  }
  func.func @transform_5(%arg0: i32) -> (i32, i32) {
    %c0_i32 = arith.constant 0 : i32
    %c0_i32_0 = arith.constant 0 : i32
    %c0_i32_1 = arith.constant 0 : i32
    return %c0_i32, %c0_i32_0 : i32, i32
  }
  func.func @transform_6(%arg0: i32) -> (i32, i32) {
    %c0_i32 = arith.constant 0 : i32
    %c0_i32_0 = arith.constant 0 : i32
    %c0_i32_1 = arith.constant 0 : i32
    return %c0_i32, %c0_i32_0 : i32, i32
  }
  func.func @transform_7(%arg0: i32) -> (i32, i32) {
    %c0_i32 = arith.constant 0 : i32
    %c0_i32_0 = arith.constant 0 : i32
    %c0_i32_1 = arith.constant 0 : i32
    return %c0_i32, %c0_i32_0 : i32, i32
  }
  func.func @transform_8(%arg0: i32) -> (i32, i32) {
    %c0_i32 = arith.constant 0 : i32
    %c0_i32_0 = arith.constant 0 : i32
    %c0_i32_1 = arith.constant 0 : i32
    return %c0_i32, %c0_i32_0 : i32, i32
  }
  func.func @transform_9(%arg0: i32) -> (i32, i32) {
    %c0_i32 = arith.constant 0 : i32
    %c0_i32_0 = arith.constant 0 : i32
    %c0_i32_1 = arith.constant 0 : i32
    return %c0_i32, %c0_i32_0 : i32, i32
  }
  func.func @transform_10(%arg0: i32) -> (i32, i32, i32, i32) {
    %c0_i32 = arith.constant 0 : i32
    %c0_i32_0 = arith.constant 0 : i32
    %c0_i32_1 = arith.constant 0 : i32
    %c0_i32_2 = arith.constant 0 : i32
    %c0_i32_3 = arith.constant 0 : i32
    return %c0_i32, %c0_i32_0, %c0_i32_1, %c0_i32_2 : i32, i32, i32, i32
  }
  func.func @transform_11(%arg0: i32) -> (i32, i32) {
    %c0_i32 = arith.constant 0 : i32
    %c0_i32_0 = arith.constant 0 : i32
    %c0_i32_1 = arith.constant 0 : i32
    return %c0_i32, %c0_i32_0 : i32, i32
  }
  func.func @transform_12(%arg0: i32) -> (i32, i32) {
    %c0_i32 = arith.constant 0 : i32
    %c0_i32_0 = arith.constant 0 : i32
    %c0_i32_1 = arith.constant 0 : i32
    return %c0_i32, %c0_i32_0 : i32, i32
  }
  func.func @transform_13(%arg0: i32) -> (i32, i32, i32) {
    %c0_i32 = arith.constant 0 : i32
    %c0_i32_0 = arith.constant 0 : i32
    %c0_i32_1 = arith.constant 0 : i32
    return %arg0, %c0_i32, %c0_i32_0 : i32, i32, i32
  }
}

</mosaic_0001>

<bundles_post_ra>
// kernel: tpu_custom_call.1
= control target key start
LH: loop header
LB: loop body
LE: loop exit
PB: predicated region body
PF: predicated region fallthrough
CT: control target
= control target key end

     0   :  { %s1799_s0 = inlined_call_operand.vmem [shape: f32[2,4,256], index: 0, kind: input, shape index: {}]   ;;  %s1800_s1 = inlined_call_operand.vmem [shape: f32[4,4], index: 1, kind: input, shape index: {}]   ;;  %s1801_s2 = inlined_call_operand.vmem [shape: f32[4,1], index: 2, kind: input, shape index: {}]   ;;  %s1802_s3 = inlined_call_operand.vmem [shape: f32[4,1], index: 3, kind: input, shape index: {}]   ;;  %s1803_s4 = inlined_call_operand.vmem [shape: f32[3,3,4,1], index: 4, kind: input, shape index: {}]   ;;  %s1804_s5 = inlined_call_operand.vmem [shape: f32[4,1], index: 5, kind: input, shape index: {}]   ;;  %s1805_s6 = inlined_call_operand.vmem [shape: f32[4,1], index: 6, kind: input, shape index: {}]   ;;  %s1806_s7 = inlined_call_operand.vmem [shape: f32[2,8], index: 7, kind: input, shape index: {}]   ;;  %s1807_s8 = inlined_call_operand.vmem [shape: f32[2,1], index: 8, kind: input, shape index: {}]   ;;  %s1808_s9 = inlined_call_operand.vmem [shape: f32[2,1], index: 9, kind: input, shape index: {}]   ;;  %s1809_s10 = inlined_call_operand.vmem [shape: f32[3,3,2,1], index: 10, kind: input, shape index: {}]   ;;  %s1810_s11 = inlined_call_operand.vmem [shape: f32[2,1], index: 11, kind: input, shape index: {}]   ;;  %s1811_s12 = inlined_call_operand.vmem [shape: f32[2,1], index: 12, kind: input, shape index: {}]   ;;  %s1812_s13 = inlined_call_operand.hbm [shape: f32[2,4,256], index: 13, kind: output, shape index: {}]  }
   0x1   :  { %1831 = sst [smem:[#allocation6_spill]] %s1799_s0 }
   0x2   :  { %1832 = sst [smem:[#allocation7_spill]] %s1800_s1 }
   0x3   :  { %18 = vsyncpa [#allocation3], 0 }
   0x4   :  { %20 = vsyncpa [#allocation3 + $0x1], 0  ;;  %s1389_s25 = smov 0   ;;  %s1391_s26 = smov 0  }
   0x5   :  { %s1393_s27 = smov 0   ;;  %s1395_s28 = smov 0  }
   0x6 LB: > { %s1410_s29 = sadd.s32 4294967295, %s1307_s28   ;;  %s1173_s30 = sadd.s32 4294967294, %s1307_s28   ;;  %s1307_s28 = sphi %s1395_s28, %s1859_s28   ;;  %s1303_s27 = sphi %s1393_s27, %s1858_s27   ;;  %s1299_s26 = sphi %s1391_s26, %s1857_s26   ;;  %s1295_s25 = sphi %s1389_s25, %s1856_s25  }
   0x7   : > { %s1414_s14 = sadd.s32 1, %s1307_s28   ;;  %s311_s15 = sadd.s32 1, %s1303_s27 }
   0x8   : > { %s308_s16 = ssub.s32 %s1307_s28, %s1414_s14  ;;  %p321_p0 = scmp.ne.s32.totalorder %s1303_s27, %s1299_s26 }
   0x9   : > { %p309_p1 = scmp.eq.s32.totalorder %s308_s16, 0  ;;  %p322_p2 = scmp.eq.s32.totalorder %s1410_s29, 1 }
   0xa   : > { %p327_p3 = scmp.ne.s32.totalorder %s1299_s26, %s1295_s25  ;;  %p328_p4 = scmp.eq.s32.totalorder %s1173_s30, 1 }
   0xb   : > { %s1425_s17 = scalar_select %p309_p1, %s1303_s27, %s311_s15  }
   0xc   : > { %p1427_p5 = por %p322_p2, %p321_p0  ;;  %p1431_p6 = por %p328_p4, %p327_p3 }
   0xd   : > { %1833 = sst [smem:[#allocation5_spill]] %s1425_s17  ;;  %p1176_p7 = scmp.ge.s32.totalorder %s1307_s28, 1 }
   0xe   : > { %p390_p8 = scmp.lt.s32.totalorder %s1307_s28, 3 }
  0x10   : > { %p391_p9 = pnand %p1176_p7, %p390_p8 }
  0x11   : > { %p434_p10 = scmp.lt.s32.totalorder (!%p391_p9), %s1410_s29, 1  ;;  %s1836_s0 = sld [smem:[#allocation6_spill]] (!%p391_p9) }
  0x12   : > { %394 = sbr.rel (%p391_p9) target bundleno = 935 (0x3a7), region = 72  ;;  %s1837_s1 = sld [smem:[#allocation7_spill]] (!%p391_p9) }
  0x13   : > { %s1821_s16 = smov (!%p391_p9), 112   ;;  %s1819_s20 = smov (!%p391_p9), 96  }
  0x14   : > { %s1813_s21 = smov (!%p391_p9), 110   ;;  %s1815_s17 = smov (!%p391_p9), 111  }
  0x15   : > { %s1823_s24 = smov (!%p391_p9), 95   ;;  %s1827_s30 = smov (!%p391_p9), 127  }
  0x17   : > { %v525_v0 = vld [vmem:[%s1801_s2] sm:$0xf]  ;;  %v1309_v1 = vmov 0   ;;  %s435_s22 = scalar_select %p434_p10, %s1410_s29, 1  ;;  %vm480_vm0 = vcmask 1043456   ;;  %vm476_vm1 = vcmask 31744   ;;  %v440_v26 = vlaneseq }
  0x18   : > { %1242 = vset.pattern.permute.xlu0 %v1309_v1  ;;  %1244 = vset.pattern.permute.xlu1 %v1309_v1  ;;  %v533_v3 = vld [vmem:[%s1802_s3] sm:$0xf]  ;;  %v557_v7 = vld [vmem:[%s1803_s4 + $0x4] sm:$0xf]  ;;  %v559_v9 = vld [vmem:[%s1803_s4 + $0xc] sm:$0xf] }
  0x19   : > { %528 = vperm.xlu0 %1242, %v525_v0   ;;  %1243 = vset.pattern.permute.xlu2 %v1309_v1  ;;  %s1191_s23 = sshll.u32 %s435_s22, 3  ;;  %v471_v4 = vld [vmem:[%s1837_s1] sm:$0xf]  ;;  %v561_v10 = vld [vmem:[%s1803_s4 + $0x14] sm:$0xf]  ;;  %v1491_v27 = vand.u32 127, %v440_v26 }
  0x1a   : > { %s438_s15 = scalar_lea.vmem %s1836_s0, %s1191_s23  ;;  %v556_v8 = vld [vmem:[%s1803_s4] sm:$0xf]  ;;  %645 = vperm.xlu1 %1244, %v559_v9   ;;  %v560_v11 = vld [vmem:[%s1803_s4 + $0x10] sm:$0xf]  ;;  %v563_v12 = vld [vmem:[%s1803_s4 + $0x1c] sm:$0xf] }
  0x1b   : > { %v439_v2 = vld [vmem:[%s438_s15] sm:$0xff]  ;;  %652 = vperm.xlu2 %1243, %v560_v11   ;;  %v562_v14 = vld [vmem:[%s1803_s4 + $0x18] sm:$0xf]  ;;  %s1829_s0 = smov 17   ;;  %v447_v30 = vand.u32 15, %v1491_v27  ;;  %vm549_vm2 = vcmask 138240  }
  0x1c   : > { %473 = vst [vmem:[#allocation1] ss:$2 sm:$0xff] %v439_v2  ;;  %v564_v22 = vld [vmem:[%s1803_s4 + $0x20] sm:$0xf]  ;;  %v1503_v32 = vadd.s32 128, %v1491_v27  ;;  %s1817_s22 = smov 94  }
  0x1d   : > { %vm1498_vm3 = vcmp.ge.s32.totalorder %v447_v30, 1  ;;  %s1825_s23 = smov 126   ;;  %v766_v54 = vld [vmem:[%s1804_s5] sm:$0xf]  ;;  %v558_v57 = vld [vmem:[%s1803_s4 + $0x8] sm:$0xf] }
  0x1e   : > { %v454_v37 = vand.u32 15, %v1503_v32  ;;  %v845_v58 = vld [vmem:[%s1808_s9] sm:$0x3]  ;;  %v866_v62 = vld [vmem:[%s1809_s10 + $0x2] sm:$0x3]  ;;  %vm636_vm5 = vcmask 916480  }
  0x1f   : > { %v774_v59 = vld [vmem:[%s1805_s6] sm:$0xf]  ;;  %v867_v63 = vld [vmem:[%s1809_s10 + $0x4] sm:$0x3]  ;;  %v869_v0 = vld [vmem:[%s1809_s10 + $0x8] sm:$0x3] }
  0x20   : > { %vm1514_vm4 = vcmp.ge.s32.totalorder %v454_v37, 1  ;;  %v837_v60 = vld [vmem:[%s1807_s8] sm:$0x3]  ;;  %v872_v1 = vld [vmem:[%s1809_s10 + $0xe] sm:$0x3]  ;;  %vm702_vm6 = vcmask 785408  }
  0x21   : > { %536 = vperm.xlu0 %1242, %v533_v3   ;;  %v865_v61 = vld [vmem:[%s1809_s10] sm:$0x3]  ;;  %v871_v3 = vld [vmem:[%s1809_s10 + $0xc] sm:$0x3]  ;;  %vm746_vm7 = vcmask 769024   ;;  %vm1596_vm8 = vcmp.le.s32.totalorder %v447_v30, 14 }
  0x22   : > { %689 = vperm.xlu1 %1244, %v561_v10   ;;  %vm1602_vm9 = vcmp.le.s32.totalorder %v454_v37, 14  ;;  %vm680_vm10 = vcmask 900096   ;;  %vm733_vm11 = vcmask 777216   ;;  %vm614_vm12 = vcmask 1031168   ;;  %s1847_s15 = smov 126  }
  0x23   : > { %v474_v5 = vld.sshfl [vmem:[#allocation1] sm:$0xff pattern:$0x75316420]  ;;  %v475_v6 = vld.sshfl [vmem:[#allocation1 + $0x8] sm:$0xff pattern:$0x75316420]  ;;  %718 = vperm.xlu2 %1243, %v563_v12  }
  0x24   : > { %1180 = vmatpush.msk.msra.mxu0 %vm480_vm0, %v474_v5  ;;  %1182 = vmatpush.msk.msra.mxu1 %vm480_vm0, %v475_v6  ;;  %1084 = vst [vmem:[#allocation1] ss:$2 sm:$0xff] %v439_v2  ;;  %v868_v2 = vld [vmem:[%s1809_s10 + $0x6] sm:$0x3]  ;;  %v870_v5 = vld [vmem:[%s1809_s10 + $0xa] sm:$0x3] }
  0x25   : > { %1181 = vmatmul.msk.f32.vlgmr.msra.gmra.mxu0 %vm476_vm1, %v471_v4  ;;  %1183 = vmatmul.msk.f32.vlgmr.msra.gmra.mxu1 %vm476_vm1, %v471_v4  ;;  %vm667_vm13 = vcmask 908288   ;;  %vm595_vm14 = vcmask 1039360   ;;  %vm793_vm15 = vcmask 64512   ;;  %vm1081_vm1 = vcmask 1041408  }
  0x29   : > { %580 = vperm.xlu0 %1242, %v557_v7  }
  0x2b   : > { %711 = vperm.xlu2 %1243, %v562_v14  }
  0x31   : > { %573 = vperm.xlu0 %1242, %v556_v8  }
  0x33   : > { %755 = vperm.xlu2 %1243, %v564_v22  }
  0x75   : > { %v653_v45 = vpop.permute.xlu2 %652 }
  0x7d   : > { %v719_v47 = vpop.permute.xlu2 %718 }
  0x85   : > { %v712_v4 = vpop.permute.xlu2 %711 }
  0x8b   : > { %v529_v13 = vpop.permute.xlu0 %528 }
  0x8c   : > { %v1489_v25 = vpop.permute.xlu1 %645 }
  0x8d   : > { %v1586_v6 = vpop.permute.xlu2 %755 }
  0x93   : > { %v537_v17 = vpop.permute.xlu0 %536 }
  0x94   : > { %v1493_v29 = vpop.permute.xlu1 %689 }
  0x9b   : > { %v581_v28 = vpop.permute.xlu0 %580 }
  0xa2   : > { %v502_v15 = vpop.f32.mrf.mxu0  ;;  %v522_v18 = vpop.f32.mrf.mxu1 }
  0xa3   : > { %v531_v16 = vmul.f32 %v529_v13, %v502_v15  ;;  %v532_v21 = vmul.f32 %v529_v13, %v522_v18  ;;  %v574_v35 = vpop.permute.xlu0 %573 }
  0xa5   : > { %v1474_v19 = vadd.f32 %v537_v17, %v531_v16  ;;  %v1483_v23 = vadd.f32 %v537_v17, %v532_v21 }
  0xa7   : > { %v541_v20 = vmax.f32 %v1474_v19, 0.0  ;;  %v542_v24 = vmax.f32 %v1483_v23, 0.0 }
  0xa9   : > { %545 = vrot.lane.b32.xlu1 %v541_v20, %s1829_s0 }
  0xb1   : > { %547 = vrot.lane.b32.xlu1 %v542_v24, %s1829_s0  ;;  %s1848_s0 = smov 112  }
 0x11b   : > { %v546_v33 = vpop.permute.xlu1 %545 }
 0x11c   : > { %v554_v34 = vsel %vm549_vm2, 0.0, %v546_v33 }
 0x11d   : > { %630 = vrot.lane.b32.xlu1 %v554_v34, %s1821_s16  ;;  %v569_v36 = vsel %vm1498_vm3, %v554_v34, 0.0  ;;  %v655_v48 = vmul.f32 %v653_v45, %v554_v34  ;;  %v721_v51 = vmul.f32 %v719_v47, %v554_v34  ;;  %v583_v55 = vmul.f32 %v581_v28, %v554_v34 }
 0x11e   : > { %v1510_v38 = vmul.f32 %v574_v35, %v569_v36 }
 0x123   : > { %v548_v40 = vpop.permute.xlu1 %547 }
 0x124   : > { %v550_v41 = vsel %vm549_vm2, %v546_v33, %v548_v40  ;;  %v555_v42 = vsel %vm549_vm2, %v548_v40, 0.0 }
 0x125   : > { %696 = vrot.lane.b32.xlu1 %v554_v34, %s1819_s20  ;;  %634 = vrot.lane.b32.xlu0 %v555_v42, %s1821_s16  ;;  %v570_v43 = vsel %vm1514_vm4, %v550_v41, 0.0  ;;  %v656_v46 = vmul.f32 %v653_v45, %v550_v41  ;;  %v722_v49 = vmul.f32 %v719_v47, %v550_v41  ;;  %v657_v50 = vmul.f32 %v653_v45, %v555_v42 }
 0x126   : > { %632 = vrot.lane.b32.xlu2 %v550_v41, %s1821_s16  ;;  %v1525_v44 = vmul.f32 %v574_v35, %v570_v43  ;;  %v584_v52 = vmul.f32 %v581_v28, %v550_v41  ;;  %v723_v53 = vmul.f32 %v719_v47, %v555_v42  ;;  %v585_v56 = vmul.f32 %v581_v28, %v555_v42  ;;  %s1852_s16 = smov 127  }
 0x12d   : > { %678 = vrot.lane.b32.xlu1 %v555_v42, %s1813_s21  ;;  %700 = vrot.lane.b32.xlu0 %v555_v42, %s1819_s20 }
 0x12e   : > { %698 = vrot.lane.b32.xlu2 %v550_v41, %s1819_s20  ;;  %s1853_s20 = smov 111  }
 0x135   : > { %742 = vrot.lane.b32.xlu1 %v550_v41, %s1817_s22  ;;  %676 = vrot.lane.b32.xlu0 %v550_v41, %s1813_s21 }
 0x136   : > { %674 = vrot.lane.b32.xlu2 %v554_v34, %s1813_s21  ;;  %s1846_s21 = smov 17  }
 0x13d   : > { %608 = vrot.lane.b32.xlu1 %v554_v34, %s1825_s23  ;;  %740 = vrot.lane.b32.xlu0 %v554_v34, %s1817_s22 }
 0x13e   : > { %744 = vrot.lane.b32.xlu2 %v555_v42, %s1817_s22  ;;  %s1850_s22 = smov 94  }
 0x145   : > { %612 = vrot.lane.b32.xlu0 %v555_v42, %s1825_s23  ;;  %663 = vrot.lane.b32.xlu1 %v656_v46, %s1815_s17 }
 0x146   : > { %610 = vrot.lane.b32.xlu2 %v550_v41, %s1825_s23  ;;  %s1854_s23 = smov 95  }
 0x14d   : > { %661 = vrot.lane.b32.xlu0 %v655_v48, %s1815_s17  ;;  %729 = vrot.lane.b32.xlu1 %v722_v49, %s1823_s24 }
 0x14e   : > { %665 = vrot.lane.b32.xlu2 %v657_v50, %s1815_s17  ;;  %s1851_s17 = smov 110  }
 0x155   : > { %727 = vrot.lane.b32.xlu0 %v721_v51, %s1823_s24  ;;  %591 = vrot.lane.b32.xlu1 %v584_v52, %s1827_s30 }
 0x156   : > { %731 = vrot.lane.b32.xlu2 %v723_v53, %s1823_s24  ;;  %s1265_s24 = scalar_lea.hbm %s1812_s13, 16 }
 0x15d   : > { %589 = vrot.lane.b32.xlu0 %v583_v55, %s1827_s30  ;;  %769 = vperm.xlu1 %1244, %v766_v54  }
 0x15e   : > { %593 = vrot.lane.b32.xlu2 %v585_v56, %s1827_s30  ;;  %s1849_s30 = smov 96  }
 0x165   : > { %623 = vperm.xlu0 %1242, %v558_v57   ;;  %848 = vperm.xlu1 %1244, %v845_v58  }
 0x166   : > { %777 = vperm.xlu2 %1243, %v774_v59  }
 0x16d   : > { %840 = vperm.xlu0 %1242, %v837_v60   ;;  %878 = vperm.xlu1 %1244, %v865_v61  }
 0x16e   : > { %885 = vperm.xlu2 %1243, %v866_v62  }
 0x175   : > { %922 = vperm.xlu0 %1242, %v867_v63   ;;  %950 = vperm.xlu1 %1244, %v869_v0  }
 0x176   : > { %1013 = vperm.xlu2 %1243, %v872_v1  }
 0x17d   : > { %943 = vperm.xlu0 %1242, %v868_v2   ;;  %1006 = vperm.xlu1 %1244, %v871_v3  }
 0x180   : > { %v633_v7 = vpop.permute.xlu2 %632 }
 0x185   : > { %985 = vperm.xlu0 %1242, %v870_v5  }
 0x188   : > { %v699_v11 = vpop.permute.xlu2 %698 }
 0x18f   : > { %v631_v8 = vpop.permute.xlu1 %630 }
 0x190   : > { %v675_v14 = vpop.permute.xlu2 %674  ;;  %v637_v36 = vsel %vm636_vm5, %v631_v8, %v633_v7 }
 0x191   : > { %v641_v45 = vsel %vm1498_vm3, %v637_v36, 0.0 }
 0x192   : > { %v648_v27 = vmul.f32 %v1489_v25, %v641_v45 }
 0x197   : > { %v635_v9 = vpop.permute.xlu0 %634  ;;  %v697_v10 = vpop.permute.xlu1 %696 }
 0x198   : > { %v745_v17 = vpop.permute.xlu2 %744  ;;  %v703_v41 = vsel %vm702_vm6, %v697_v10, %v699_v11  ;;  %v638_v46 = vsel %vm636_vm5, %v633_v7, %v635_v9 }
 0x199   : > { %v707_v49 = vsel %vm1498_vm3, %v703_v41, 0.0  ;;  %v642_v30 = vsel %vm1514_vm4, %v638_v46, 0.0 }
 0x19a   : > { %v714_v56 = vmul.f32 %v712_v4, %v707_v49  ;;  %v649_v60 = vmul.f32 %v1489_v25, %v642_v30 }
 0x19f   : > { %v701_v12 = vpop.permute.xlu0 %700  ;;  %v679_v13 = vpop.permute.xlu1 %678 }
 0x1a0   : > { %v611_v22 = vpop.permute.xlu2 %610  ;;  %v704_v42 = vsel %vm702_vm6, %v699_v11, %v701_v12 }
 0x1a1   : > { %v708_v50 = vsel %vm1514_vm4, %v704_v42, 0.0 }
 0x1a2   : > { %v715_v57 = vmul.f32 %v712_v4, %v708_v50 }
 0x1a7   : > { %v677_v15 = vpop.permute.xlu0 %676  ;;  %v743_v16 = vpop.permute.xlu1 %742 }
 0x1a8   : > { %v666_v34 = vpop.permute.xlu2 %665  ;;  %v748_v32 = vsel %vm746_vm7, %v743_v16, %v745_v17  ;;  %v681_v51 = vsel %vm680_vm10, %v675_v14, %v677_v15  ;;  %v682_v52 = vsel %vm680_vm10, %v677_v15, %v679_v13 }
 0x1a9   : > { %v752_v61 = vsel %vm1602_vm9, %v748_v32, 0.0  ;;  %v685_v63 = vsel %vm1596_vm8, %v681_v51, 0.0  ;;  %v686_v0 = vsel %vm1602_vm9, %v682_v52, 0.0 }
 0x1aa   : > { %v759_v25 = vmul.f32 %v1586_v6, %v752_v61  ;;  %v692_v11 = vmul.f32 %v1493_v29, %v685_v63  ;;  %v693_v12 = vmul.f32 %v1493_v29, %v686_v0 }
 0x1af   : > { %v741_v18 = vpop.permute.xlu0 %740  ;;  %v609_v21 = vpop.permute.xlu1 %608 }
 0x1b0   : > { %v732_v43 = vpop.permute.xlu2 %731  ;;  %v747_v37 = vsel %vm746_vm7, %v741_v18, %v743_v16  ;;  %v615_v8 = vsel %vm614_vm12, %v609_v21, %v611_v22 }
 0x1b1   : > { %v751_v62 = vsel %vm1596_vm8, %v747_v37, 0.0 }
 0x1b2   : > { %v758_v7 = vmul.f32 %v1586_v6, %v751_v62  ;;  %v619_v6 = vsel %vm1596_vm8, %v615_v8, 0.0 }
 0x1b7   : > { %v613_v26 = vpop.permute.xlu0 %612  ;;  %v664_v28 = vpop.permute.xlu1 %663 }
 0x1b8   : > { %v669_v58 = vsel %vm667_vm13, %v664_v28, %v666_v34  ;;  %v616_v9 = vsel %vm614_vm12, %v611_v22, %v613_v26  ;;  %v594_v10 = vpop.permute.xlu2 %593 }
 0x1b9   : > { %v673_v4 = vadd.f32 %v669_v58, %v649_v60  ;;  %v620_v21 = vsel %vm1602_vm9, %v616_v9, 0.0 }
 0x1bb   : > { %v695_v17 = vadd.f32 %v693_v12, %v673_v4 }
 0x1bf   : > { %v662_v33 = vpop.permute.xlu0 %661  ;;  %v730_v40 = vpop.permute.xlu1 %729 }
 0x1c0   : > { %v735_v53 = vsel %vm733_vm11, %v730_v40, %v732_v43  ;;  %v668_v59 = vsel %vm667_vm13, %v662_v33, %v664_v28  ;;  %v778_v49 = vpop.permute.xlu2 %777 }
 0x1c1   : > { %v739_v1 = vadd.f32 %v735_v53, %v715_v57  ;;  %v672_v5 = vadd.f32 %v668_v59, %v648_v27 }
 0x1c3   : > { %v761_v15 = vadd.f32 %v759_v25, %v739_v1  ;;  %v694_v18 = vadd.f32 %v692_v11, %v672_v5 }
 0x1c5   : > { %v763_v34 = vadd.f32 %v761_v15, %v695_v17  ;;  %v1059_v15 = vld [vmem:[%s1810_s11] sm:$0x3] }
 0x1c7   : > { %v728_v35 = vpop.permute.xlu0 %727  ;;  %v592_v3 = vpop.permute.xlu1 %591 }
 0x1c8   : > { %v734_v54 = vsel %vm733_vm11, %v728_v35, %v730_v40  ;;  %v597_v13 = vsel %vm595_vm14, %v592_v3, %v594_v10  ;;  %v886_v19 = vpop.permute.xlu2 %885 }
 0x1c9   : > { %v738_v2 = vadd.f32 %v734_v54, %v714_v56  ;;  %v601_v22 = vadd.f32 %v597_v13, %v1525_v44 }
 0x1cb   : > { %v760_v16 = vadd.f32 %v758_v7, %v738_v2 }
 0x1cd   : > { %v762_v35 = vadd.f32 %v760_v16, %v694_v18  ;;  %v1067_v16 = vld [vmem:[%s1811_s12] sm:$0x3] }
 0x1cf   : > { %v590_v55 = vpop.permute.xlu0 %589  ;;  %v770_v43 = vpop.permute.xlu1 %769 }
 0x1d0   : > { %v596_v14 = vsel %vm595_vm14, %v590_v55, %v592_v3 }
 0x1d1   : > { %v600_v26 = vadd.f32 %v596_v14, %v1510_v38  ;;  %v792_v38 = vld [vmem:[%s1806_s7] sm:$0x3]  ;;  %v873_v14 = vld [vmem:[%s1809_s10 + $0x10] sm:$0x3] }
 0x1d7   : > { %v624_v28 = vpop.permute.xlu0 %623  ;;  %v849_v58 = vpop.permute.xlu1 %848 }
 0x1d8   : > { %v626_v29 = vmul.f32 %v624_v28, %v619_v6  ;;  %v627_v33 = vmul.f32 %v624_v28, %v620_v21 }
 0x1da   : > { %v628_v36 = vadd.f32 %v626_v29, %v600_v26  ;;  %v629_v40 = vadd.f32 %v627_v33, %v601_v22 }
 0x1dc   : > { %v764_v41 = vadd.f32 %v762_v35, %v628_v36  ;;  %v765_v42 = vadd.f32 %v763_v34, %v629_v40 }
 0x1de   : > { %v772_v45 = vmul.f32 %v770_v43, %v764_v41  ;;  %v773_v46 = vmul.f32 %v770_v43, %v765_v42 }
 0x1df   : > { %v841_v53 = vpop.permute.xlu0 %840  ;;  %v1687_v3 = vpop.permute.xlu1 %878 }
 0x1e0   : > { %v780_v50 = vadd.f32 %v778_v49, %v772_v45  ;;  %v781_v27 = vadd.f32 %v778_v49, %v773_v46 }
 0x1e2   : > { %v782_v30 = vmax.f32 %v780_v50, 0.0  ;;  %v783_v32 = vmax.f32 %v781_v27, 0.0 }
 0x1e4   : > { %v786_v37 = vrot.slane %v782_v30, 4  ;;  %v787_v44 = vrot.slane %v783_v32, 4 }
 0x1e6   : > { %v790_v51 = vsel %vm480_vm0, %v541_v20, %v786_v37  ;;  %v791_v52 = vsel %vm480_vm0, %v542_v24, %v787_v44  ;;  %v1014_v20 = vpop.permute.xlu2 %1013 }
 0x1e7   : > { %812 = vmatpush.msra.mxu2 %v790_v51  ;;  %832 = vmatpush.msra.mxu3 %v791_v52  ;;  %v1661_v23 = vpop.permute.xlu0 %922  ;;  %v951_v5 = vpop.permute.xlu1 %950 }
 0x1e8   : > { %1184 = vmatmul.msk.f32.vlgmr.msra.gmra.mxu2 %vm793_vm15, %v792_v38  ;;  %1185 = vmatmul.msk.f32.vlgmr.msra.gmra.mxu3 %vm793_vm15, %v792_v38 }
 0x1ef   : > { %v1668_v62 = vpop.permute.xlu0 %943  ;;  %v1007_v21 = vpop.permute.xlu1 %1006 }
 0x1f7   : > { %v1672_v63 = vpop.permute.xlu0 %985 }
 0x26b   : > { %v814_v54 = vpop.f32.mrf.mxu2  ;;  %v834_v55 = vpop.f32.mrf.mxu3 }
 0x26c   : > { %v843_v56 = vmul.f32 %v841_v53, %v814_v54  ;;  %v844_v57 = vmul.f32 %v841_v53, %v834_v55 }
 0x26e   : > { %v1653_v59 = vadd.f32 %v849_v58, %v843_v56  ;;  %v1655_v60 = vadd.f32 %v849_v58, %v844_v57 }
 0x270   : > { %857 = vrot.lane.b32.xlu0 %v1655_v60, %s1846_s21  ;;  %855 = vrot.lane.b32.xlu2 %v1653_v59, %s1846_s21 }
 0x2ca   : > { %v856_v24 = vpop.permute.xlu2 %855 }
 0x2cb   : > { %v1664_v61 = vsel %vm549_vm2, 0.0, %v856_v24 }
 0x2cc   : > { %908 = vrot.lane.b32.xlu0 %v1664_v61, %s1847_s15  ;;  %v888_v4 = vmul.f32 %v886_v19, %v1664_v61  ;;  %v1016_v9 = vmul.f32 %v1014_v20, %v1664_v61  ;;  %v953_v10 = vmul.f32 %v951_v5, %v1664_v61 }
 0x2d4   : > { %929 = vrot.lane.b32.xlu0 %v1664_v61, %s1848_s0 }
 0x2e2   : > { %v858_v0 = vpop.permute.xlu0 %857 }
 0x2e3   : > { %v859_v1 = vsel %vm549_vm2, %v856_v24, %v858_v0  ;;  %v864_v2 = vsel %vm549_vm2, %v858_v0, 0.0 }
 0x2e4   : > { %912 = vrot.lane.b32.xlu2 %v864_v2, %s1847_s15  ;;  %996 = vrot.lane.b32.xlu0 %v864_v2, %s1849_s30  ;;  %v955_v25 = vmul.f32 %v951_v5, %v864_v2  ;;  %v889_v7 = vmul.f32 %v886_v19, %v859_v1  ;;  %v890_v8 = vmul.f32 %v886_v19, %v864_v2  ;;  %v875_v46 = vsel %vm1514_vm4, %v859_v1, 0.0 }
 0x2e5   : > { %910 = vrot.lane.b32.xlu1 %v859_v1, %s1847_s15  ;;  %v954_v11 = vmul.f32 %v951_v5, %v859_v1  ;;  %v1017_v12 = vmul.f32 %v1014_v20, %v859_v1  ;;  %v1018_v13 = vmul.f32 %v1014_v20, %v864_v2  ;;  %v882_v27 = vmul.f32 %v1687_v3, %v875_v46 }
 0x2ec   : > { %933 = vrot.lane.b32.xlu2 %v864_v2, %s1848_s0  ;;  %992 = vrot.lane.b32.xlu0 %v1664_v61, %s1849_s30 }
 0x2ed   : > { %931 = vrot.lane.b32.xlu1 %v859_v1, %s1848_s0 }
 0x2f4   : > { %1038 = vrot.lane.b32.xlu0 %v864_v2, %s1850_s22  ;;  %994 = vrot.lane.b32.xlu2 %v859_v1, %s1849_s30 }
 0x2f5   : > { %971 = vrot.lane.b32.xlu1 %v1664_v61, %s1851_s17 }
 0x2fc   : > { %894 = vrot.lane.b32.xlu0 %v888_v4, %s1852_s16  ;;  %975 = vrot.lane.b32.xlu2 %v864_v2, %s1851_s17 }
 0x2fd   : > { %973 = vrot.lane.b32.xlu1 %v859_v1, %s1851_s17 }
 0x304   : > { %1036 = vrot.lane.b32.xlu2 %v859_v1, %s1850_s22  ;;  %963 = vrot.lane.b32.xlu0 %v955_v25, %s1853_s20 }
 0x305   : > { %896 = vrot.lane.b32.xlu1 %v889_v7, %s1852_s16 }
 0x30c   : > { %898 = vrot.lane.b32.xlu2 %v890_v8, %s1852_s16  ;;  %1022 = vrot.lane.b32.xlu0 %v1016_v9, %s1854_s23 }
 0x30d   : > { %959 = vrot.lane.b32.xlu1 %v953_v10, %s1853_s20 }
 0x314   : > { %961 = vrot.lane.b32.xlu2 %v954_v11, %s1853_s20  ;;  %s1192_s20 = sshll.u32 %s1410_s29, 3 }
 0x315   : > { %1024 = vrot.lane.b32.xlu1 %v1017_v12, %s1854_s23  ;;  %s1109_s21 = scalar_lea.hbm %s1812_s13, %s1192_s20 }
 0x316   : > { %s1113_s30 = sshll.u32 %s1109_s21, 4  ;;  %s1114_s30 = int_to_ptr.hbm [resolvable:$true] %s1113_s30 }
 0x317   : > { %s1259_s17 = sshra.s32 %s1114_s30, 4  ;;  %s1260_s17 = int_to_ptr.hbm [resolvable:$true] %s1259_s17 }
 0x318   : > { %s1261_s20 = scalar_lea.hbm %s1260_s17, 8  ;;  %p1266_p0 = scmp.lt.s32.totalorder %s1260_s17, %s1812_s13 }
 0x319   : > { %p1262_p11 = scmp.ne.s32.totalorder %s1260_s17, %s1261_s20  ;;  %p1267_p1 = scmp.lt.s32.totalorder %s1265_s24, %s1261_s20 }
 0x31b   : > { %p1263_p12 = pnand %p1262_p11, %p1427_p5  ;;  %p1268_p2 = por %p1267_p1, %p1266_p0 }
 0x31c   : > { %1026 = vrot.lane.b32.xlu2 %v1018_v13, %s1854_s23  ;;  %v874_v13 = vsel %vm1498_vm3, %v1664_v61, 0.0 }
 0x31d   : > { %1034 = vrot.lane.b32.xlu1 %v1664_v61, %s1850_s22  ;;  %s431_s22 = sand.u32 1, %s1299_s26   ;;  %p1264_p13 = pneg %p1263_p12 }
 0x31e   : > { %s1177_s16 = sshll.u32 %s431_s22, 3  ;;  %s1098_s29 = scalar_lea.sflag [#allocation3], %s431_s22 }
 0x31f   : > { %s433_s15 = scalar_lea.vmem [#allocation2], %s1177_s16  ;;  %p1269_p3 = pnand %p1268_p2, %p1264_p13 }
 0x320   : > { %s1111_s0 = sshll.u32 %s433_s15, 4  ;;  %s1112_s0 = int_to_ptr.vmem [resolvable:$true] %s1111_s0 }
 0x324   : > { %1048 = vperm.xlu2 %1243, %v873_v14  }
 0x325   : > { %1062 = vperm.xlu1 %1244, %v1059_v15  }
 0x32c   : > { %1070 = vperm.xlu2 %1243, %v1067_v16  }
 0x33e   : > { %v913_v17 = vpop.permute.xlu2 %912  ;;  %v909_v28 = vpop.permute.xlu0 %908 }
 0x346   : > { %v934_v18 = vpop.permute.xlu2 %933  ;;  %v930_v22 = vpop.permute.xlu0 %929 }
 0x34e   : > { %v995_v6 = vpop.permute.xlu2 %994 }
 0x356   : > { %v976_v26 = vpop.permute.xlu2 %975  ;;  %v997_v33 = vpop.permute.xlu0 %996 }
 0x357   : > { %v911_v29 = vpop.permute.xlu1 %910  ;;  %v999_v54 = vsel %vm702_vm6, %v995_v6, %v997_v33  ;;  %v881_v33 = vmul.f32 %v1687_v3, %v874_v13 }
 0x358   : > { %v915_v45 = vsel %vm614_vm12, %v911_v29, %v913_v17  ;;  %v1003_v55 = vsel %vm1514_vm4, %v999_v54, 0.0  ;;  %v914_v15 = vsel %vm614_vm12, %v909_v28, %v911_v29 }
 0x359   : > { %v919_v50 = vsel %vm1602_vm9, %v915_v45, 0.0  ;;  %v1010_v58 = vmul.f32 %v1007_v21, %v1003_v55 }
 0x35a   : > { %v926_v37 = vmul.f32 %v1661_v23, %v919_v50 }
 0x35e   : > { %v1037_v35 = vpop.permute.xlu2 %1036  ;;  %v993_v36 = vpop.permute.xlu0 %992 }
 0x35f   : > { %v932_v34 = vpop.permute.xlu1 %931  ;;  %v998_v25 = vsel %vm702_vm6, %v993_v36, %v995_v6 }
 0x360   : > { %v936_v56 = vsel %vm636_vm5, %v932_v34, %v934_v18  ;;  %v935_v24 = vsel %vm636_vm5, %v930_v22, %v932_v34  ;;  %v1002_v16 = vsel %vm1498_vm3, %v998_v25, 0.0 }
 0x361   : > { %v940_v19 = vsel %vm1514_vm4, %v936_v56, 0.0  ;;  %v939_v39 = vsel %vm1498_vm3, %v935_v24, 0.0  ;;  %v1009_v31 = vmul.f32 %v1007_v21, %v1002_v16 }
 0x362   : > { %v947_v7 = vmul.f32 %v1668_v62, %v940_v19  ;;  %v946_v18 = vmul.f32 %v1668_v62, %v939_v39 }
 0x366   : > { %v899_v41 = vpop.permute.xlu2 %898  ;;  %v1039_v43 = vpop.permute.xlu0 %1038 }
 0x367   : > { %v972_v40 = vpop.permute.xlu1 %971  ;;  %v1041_v0 = vsel %vm746_vm7, %v1037_v35, %v1039_v43 }
 0x368   : > { %v1045_v11 = vsel %vm1602_vm9, %v1041_v0, 0.0 }
 0x36e   : > { %v962_v49 = vpop.permute.xlu2 %961  ;;  %v895_v38 = vpop.permute.xlu0 %894 }
 0x36f   : > { %v974_v42 = vpop.permute.xlu1 %973 }
 0x370   : > { %v978_v1 = vsel %vm680_vm10, %v974_v42, %v976_v26  ;;  %v977_v9 = vsel %vm680_vm10, %v972_v40, %v974_v42  ;;  %v918_v40 = vsel %vm1596_vm8, %v914_v15, 0.0 }
 0x371   : > { %v982_v10 = vsel %vm1602_vm9, %v978_v1, 0.0  ;;  %v981_v6 = vsel %vm1596_vm8, %v977_v9, 0.0  ;;  %v925_v21 = vmul.f32 %v1661_v23, %v918_v40  ;;  %v1085_v23 = vld.sshfl [vmem:[#allocation1] sm:$0xff pattern:$0x75316420] }
 0x372   : > { %v989_v48 = vmul.f32 %v1672_v63, %v982_v10 }
 0x376   : > { %v1027_v52 = vpop.permute.xlu2 %1026  ;;  %v964_v57 = vpop.permute.xlu0 %963 }
 0x377   : > { %v897_v30 = vpop.permute.xlu1 %896  ;;  %v966_v4 = vsel %vm667_vm13, %v962_v49, %v964_v57 }
 0x378   : > { %v901_v32 = vsel %vm595_vm14, %v897_v30, %v899_v41  ;;  %v970_v12 = vadd.f32 %v966_v4, %v947_v7  ;;  %v900_v61 = vsel %vm595_vm14, %v895_v38, %v897_v30  ;;  %v988_v41 = vmul.f32 %v1672_v63, %v981_v6 }
 0x379   : > { %v905_v44 = vadd.f32 %v901_v32, %v882_v27  ;;  %v904_v3 = vadd.f32 %v900_v61, %v881_v33 }
 0x37a   : > { %v991_v34 = vadd.f32 %v989_v48, %v970_v12 }
 0x37b   : > { %v928_v51 = vadd.f32 %v926_v37, %v905_v44  ;;  %v927_v27 = vadd.f32 %v925_v21, %v904_v3 }
 0x37e   : > { %v1049_v5 = vpop.permute.xlu2 %1048  ;;  %v1023_v22 = vpop.permute.xlu0 %1022 }
 0x37f   : > { %v960_v53 = vpop.permute.xlu1 %959  ;;  %v1052_v14 = vmul.f32 %v1049_v5, %v1045_v11 }
 0x380   : > { %v965_v17 = vsel %vm667_vm13, %v960_v53, %v962_v49 }
 0x381   : > { %v969_v36 = vadd.f32 %v965_v17, %v946_v18 }
 0x383   : > { %v990_v49 = vadd.f32 %v988_v41, %v969_v36 }
 0x386   : > { %v1071_v63 = vpop.permute.xlu2 %1070 }
 0x387   : > { %v1025_v20 = vpop.permute.xlu1 %1024 }
 0x388   : > { %v1029_v2 = vsel %vm733_vm11, %v1025_v20, %v1027_v52  ;;  %v1028_v28 = vsel %vm733_vm11, %v1023_v22, %v1025_v20  ;;  %v1086_v52 = vld.sshfl [vmem:[#allocation1 + $0x8] sm:$0xff pattern:$0x75316420] }
 0x389   : > { %v1033_v8 = vadd.f32 %v1029_v2, %v1010_v58  ;;  %v1032_v43 = vadd.f32 %v1028_v28, %v1009_v31 }
 0x38b   : > { %v1054_v26 = vadd.f32 %v1052_v14, %v1033_v8 }
 0x38d   : > { %v1056_v46 = vadd.f32 %v1054_v26, %v991_v34 }
 0x38f   : > { %v1035_v29 = vpop.permute.xlu1 %1034 }
 0x390   : > { %v1040_v62 = vsel %vm746_vm7, %v1035_v29, %v1037_v35  ;;  %v1058_v35 = vadd.f32 %v1056_v46, %v928_v51 }
 0x391   : > { %v1044_v42 = vsel %vm1596_vm8, %v1040_v62, 0.0 }
 0x392   : > { %v1051_v45 = vmul.f32 %v1049_v5, %v1044_v42 }
 0x394   : > { %v1053_v50 = vadd.f32 %v1051_v45, %v1032_v43 }
 0x396   : > { %v1055_v30 = vadd.f32 %v1053_v50, %v990_v49 }
 0x397   : > { %v1063_v32 = vpop.permute.xlu1 %1062 }
 0x398   : > { %v1057_v37 = vadd.f32 %v1055_v30, %v927_v27  ;;  %v1066_v44 = vmul.f32 %v1063_v32, %v1058_v35 }
 0x39a   : > { %v1065_v47 = vmul.f32 %v1063_v32, %v1057_v37  ;;  %v1074_v38 = vadd.f32 %v1071_v63, %v1066_v44 }
 0x39c   : > { %v1073_v53 = vadd.f32 %v1071_v63, %v1065_v47  ;;  %v1078_v54 = vrot.slane %v1074_v38, 6 }
 0x39e   : > { %v1077_v55 = vrot.slane %v1073_v53, 6  ;;  %v1083_v51 = vsel %vm1081_vm1, %v1655_v60, %v1078_v54 }
 0x39f   : > { %v1090_v56 = vadd.f32 %v1086_v52, %v1083_v51 }
 0x3a0   : > { %v1082_v57 = vsel %vm1081_vm1, %v1653_v59, %v1077_v55 }
 0x3a1   : > { %v1089_v58 = vadd.f32 %v1085_v23, %v1082_v57  ;;  %v1093_v19 = vrot.slane %v1090_v56, 4 }
 0x3a3   : > { %v1094_v20 = vsel %vm480_vm0, %v1089_v58, %v1093_v19 }
 0x3a4   : > { %1096 = vst [vmem:[%s433_s15] sm:$0xff] %v1094_v20 }
 0x3a5   : > { %1272 = shalt.err (!%p1269_p3)
}
 0x3a6   : > { %1193 = dma.vmem_to_hbm [thread:$0]  (%p1427_p5), %s1112_s0, 128, %s1114_s30, %s1098_s29  }
 0x3a7 PF: > { %p1199_p4 = scmp.ge.s32.totalorder %s1307_s28, 2  ;;  %s1125_s22 = sand.u32 1, %s1295_s25  }
 0x3a8   : > { %s1126_s15 = scalar_lea.sflag [#allocation3], %s1125_s22 }
 0x3a9   : > { %p1196_p7 = pnand %p1199_p4, %p1431_p6 }
 0x3ab   : > { %p1197_p8 = pneg %p1196_p7 }
 0x3ad   : > { %1290 = dma.done.wait (%p1197_p8), %s1126_s15, 128  }
 0x3ae   : > { %1292 = vsyncadd (%p1197_p8), %s1126_s15, 4294967168  ;;  %s1855_s1 = sld [smem:[#allocation5_spill]]  ;;  %p23_p9 = scmp.ge.s32.totalorder %s1414_s14, 4  }
 0x3af   : > { %s1856_s25 = smov %s1299_s26  ;;  %s1857_s26 = smov %s1303_s27 }
 0x3b0   : > { %s1859_s28 = smov %s1414_s14  ;;  %25 = sbr.rel (!%p23_p9) target bundleno = 6 (0x6), region = 107 }
 0x3b4   : > { %s1858_s27 = smov %s1855_s1 }
 0x3b5   :  { %1132 = vsyncpa [#allocation3], 1 }
 0x3b6   :  { %1134 = vsyncpa [#allocation3 + $0x1], 1 }

</bundles_post_ra>
